<compile_context>
chip_gen: v7x
topology: tpu7x:2x2x1
jax: 0.10.0
libtpu: 0.0.40
codegen_flags: <defaults>
</compile_context>

<pallas_src>
import jax
import jax.numpy as jnp
from jax.experimental import pallas as pl
from jax.experimental.pallas import tpu as pltpu

KERNEL = 7
PAD = KERNEL // 2


# --------------------------------------------------------------------------- #
# Kernel
# --------------------------------------------------------------------------- #
def fsa_kernel(x_ref, coef_ref, aw_ref, ah_ref, o_ref):
    tcg, h, gw = x_ref.shape
    mxu_dtype = aw_ref.dtype
    # True f32 pooling for f32 inputs; bf16 inputs use the native bf16 MXU path.
    prec = (jax.lax.Precision.HIGHEST if mxu_dtype == jnp.float32
            else jax.lax.Precision.DEFAULT)

    x = x_ref[...]                                   # (TCg, H, GW), I/O dtype

    # ---- horizontal (W-axis) reflection average pool ------------------------
    # One long-M 2-D matmul: fold the channel-group batch into M.
    # (Free sublane merge when H % 8 == 0 for f32 / H % 16 == 0 for bf16.)
    hori_l = jnp.dot(
        x.astype(mxu_dtype).reshape(tcg * h, gw), aw_ref[...],
        preferred_element_type=jnp.float32, precision=prec,
    ).reshape(tcg, h, gw)                            # f32

    x_f = x.astype(jnp.float32)
    coef = coef_ref[...]                             # (TCg, 5, GW) f32
    ah = ah_ref[...]                                 # (H, H), MXU dtype

    # ---- vertical (H-axis) pool + per-channel affine mixing -----------------
    # Static unroll over the (small) channel-group tile; the single (H, H)
    # weight tile is reused by every per-group matmul.
    for t in range(tcg):
        a = coef[t, 0]                               # (GW,) per-lane coeffs
        b = coef[t, 1]
        e = coef[t, 2]
        f = coef[t, 3]
        beta = coef[t, 4]
        xt = x_f[t]                                  # (H, GW) f32
        hori_out = a * xt + b * hori_l[t]            # lane-dense VPU, f32
        vert_l = jnp.dot(ah, hori_out.astype(mxu_dtype),
                         preferred_element_type=jnp.float32, precision=prec)
        o_ref[t] = (beta * xt + e * hori_out + f * vert_l).astype(o_ref.dtype)


# --------------------------------------------------------------------------- #
# Host-side helpers
# --------------------------------------------------------------------------- #
def _reflect_index(i, L):
    if i < 0:
        return -i
    if i >= L:
        return 2 * (L - 1) - i
    return i


def _pool_matrix(L, ksize=KERNEL):
    """M[out, src]: weights of the reflection-padded moving average
    (ReflectionPad + AvgPool, stride 1) along an axis of length L."""
    pad = ksize // 2
    assert L > pad, "reflection pad requires spatial extent > kernel//2"
    m = [[0.0] * L for _ in range(L)]
    for out in range(L):
        for o in range(-pad, pad + 1):
            m[out][_reflect_index(out + o, L)] += 1.0 / ksize
    return jnp.asarray(m, dtype=jnp.float32)


def _vmem_limit_bytes():
    cap = 64 << 20                                  # conservative (v7x) fallback
    try:
        info = pltpu.get_tpu_info()
        cap = int(getattr(info, "vmem_capacity_bytes", cap) or cap)
    except Exception:
        pass
    # 3/4 of physical VMEM: ~96 MiB on v5e/v6e (128 MiB), ~48 MiB on v7x (64 MiB).
    return (3 * cap) // 4


def _pick_group_tile(n, cg, h, gw, io_itemsize, vmem_limit_bytes):
    """Channel-group tile: biggest tile whose FULL per-step live set
    (2x double-buffered in/out blocks in the I/O dtype + ~2 block-sized f32
    intermediates + coef tile + pool matrices) fits in ~half the scoped-VMEM
    limit, capped for unroll size and megacore step count."""
    per_group = h * gw * (4 * io_itemsize + 2 * 4) + 2 * 8 * gw * 4
    fixed = 2 * (gw * gw + h * h) * 4 + 4 * h * gw * 4 + (1 << 20)
    budget = vmem_limit_bytes // 2 - fixed
    tcg = max(1, min(cg, budget // per_group))
    # Bound the unrolled per-group vertical-pool loop.
    # TODO(synk): chunked block-diagonal vertical pooling would lift this cap.
    tcg = min(tcg, 16)
    # Keep >= 4 grid steps when possible so both v7x TensorCores get work.
    min_steps = min(4, n * cg)
    c_steps = -(-min_steps // n)
    if c_steps > 1:
        tcg = min(tcg, max(1, cg // c_steps))
    return tcg


def frequency_strip_attention(x, params):
    N, C, H, W = x.shape
    assert H > PAD and W > PAD, "reflection pad needs spatial extent > kernel//2"
    hl, hh, vl, vh, gamma, beta = params

    io_dtype = x.dtype
    io_itemsize = jnp.dtype(io_dtype).itemsize
    mxu_dtype = jnp.bfloat16 if io_dtype == jnp.bfloat16 else jnp.float32

    # ---- lane packing: G channels side by side along the lane axis ----------
    G = max(1, min(C, 128 // W)) if W < 128 else 1
    GW = G * W
    Cg = -(-C // G)                                   # channel groups

    vmem_limit = _vmem_limit_bytes()
    TCg = _pick_group_tile(N, Cg, H, GW, io_itemsize, vmem_limit)
    Cg_pad = -(-Cg // TCg) * TCg
    C_pad = Cg_pad * G

    # ---- fold the two strip-mixing affines into 5 per-channel coefficients --
    flat = lambda t: jnp.asarray(t, jnp.float32).reshape(-1)        # (C,)
    a = flat(hh) + 1.0
    b = flat(hl) - flat(hh) - 1.0
    e = flat(gamma) * (flat(vh) + 1.0)
    f = flat(gamma) * (flat(vl) - flat(vh) - 1.0)
    coef = jnp.stack([a, b, e, f, flat(beta)], axis=0)              # (5, C)
    coef = jnp.pad(coef, ((0, 0), (0, C_pad - C)))
    coef = jnp.repeat(coef.reshape(5, Cg_pad, G), W, axis=-1)       # (5, Cg_pad, GW)
    coef = jnp.transpose(coef, (1, 0, 2))                           # (Cg_pad, 5, GW)

    # ---- constant pooling matrices (reflection pad + 1/7 band) --------------
    pw = _pool_matrix(W)                                            # (W, W)
    ph = _pool_matrix(H)                                            # (H, H)
    aw_bd = jnp.kron(jnp.eye(G, dtype=jnp.float32), pw.T).astype(mxu_dtype)
    ah = ph.astype(mxu_dtype)

    # ---- pack x: (N, C, H, W) -> (N, Cg_pad, H, G*W) -------------------------
    # TODO(synk): for very large C*W this wrapper repack is extra HBM traffic;
    # fold it into the producer layout or repack in-kernel instead.
    xp = x if C_pad == C else jnp.pad(x, ((0, 0), (0, C_pad - C), (0, 0), (0, 0)))
    xp = xp.reshape(N, Cg_pad, G, H, W).transpose(0, 1, 3, 2, 4)
    xp = xp.reshape(N, Cg_pad, H, GW)

    grid = (N, Cg_pad // TCg)

    elems = N * Cg_pad * H * GW
    cost = pl.CostEstimate(
        flops=2 * elems * GW + 2 * elems * H + 8 * elems,
        transcendentals=0,
        bytes_accessed=2 * elems * io_itemsize + coef.size * 4
        + (GW * GW + H * H) * jnp.dtype(mxu_dtype).itemsize,
    )

    out_packed = pl.pallas_call(
        fsa_kernel,
        out_shape=jax.ShapeDtypeStruct((N, Cg_pad, H, GW), io_dtype),
        grid_spec=pltpu.PrefetchScalarGridSpec(
            num_scalar_prefetch=0,
            grid=grid,
            in_specs=[
                pl.BlockSpec((pl.Squeezed(), TCg, H, GW),
                             lambda n, c: (n, c, 0, 0)),
                pl.BlockSpec((TCg, 5, GW), lambda n, c: (c, 0, 0)),
                pl.BlockSpec((GW, GW), lambda n, c: (0, 0)),
                pl.BlockSpec((H, H), lambda n, c: (0, 0)),
            ],
            out_specs=pl.BlockSpec((pl.Squeezed(), TCg, H, GW),
                                   lambda n, c: (n, c, 0, 0)),
        ),
        compiler_params=pltpu.CompilerParams(
            dimension_semantics=("parallel", "parallel"),
            vmem_limit_bytes=vmem_limit,
        ),
        cost_estimate=cost,
    )(xp, coef, aw_bd, ah)

    # ---- unpack back to (N, C, H, W) -----------------------------------------
    out = out_packed.reshape(N, Cg_pad, H, G, W).transpose(0, 1, 3, 2, 4)
    return out.reshape(N, C_pad, H, W)[:, :C]


# --------------------------------------------------------------------------- #
# Pure-JAX reference (matches the PyTorch forward exactly)
# --------------------------------------------------------------------------- #
def frequency_strip_attention_ref(x, params):
    hl, hh, vl, vh, gamma, beta = params

    def pool(arr, axis):
        pad_cfg = [(0, 0)] * arr.ndim
        pad_cfg[axis] = (PAD, PAD)
        xp = jnp.pad(arr, pad_cfg, mode="reflect")
        acc = 0.0
        for o in range(KERNEL):
            idx = [slice(None)] * arr.ndim
            idx[axis] = slice(o, o + arr.shape[axis])
            acc = acc + xp[tuple(idx)]
        return acc / KERNEL

    hori_l = pool(x, 3)
    hori_h = x - hori_l
    hori_out = hl * hori_l + (hh + 1.0) * hori_h
    vert_l = pool(hori_out, 2)
    vert_h = hori_out - vert_l
    vert_out = vl * vert_l + (vh + 1.0) * vert_h
    return x * beta + vert_out * gamma


if __name__ == "__main__":
    N, C, H, W = 2, 4, 16, 16

    key = jax.random.PRNGKey(0)
    kx, k1, k2, k3, k4, k5, k6 = jax.random.split(key, 7)
    x = jax.random.normal(kx, (N, C, H, W), dtype=jnp.float32)

    # Parameter shapes follow nn.Parameter(torch.zeros/ones(k, 1, 1)).
    # Deterministic non-trivial init so the kernel path is actually exercised
    # (the PyTorch default init of zeros would make the op the identity).
    hori_low = 0.1 * jax.random.normal(k1, (C, 1, 1), dtype=jnp.float32)
    hori_high = 0.1 * jax.random.normal(k2, (C, 1, 1), dtype=jnp.float32)
    vert_low = 0.1 * jax.random.normal(k3, (C, 1, 1), dtype=jnp.float32)
    vert_high = 0.1 * jax.random.normal(k4, (C, 1, 1), dtype=jnp.float32)
    gamma = 0.1 * jax.random.normal(k5, (C, 1, 1), dtype=jnp.float32)
    beta = jnp.ones((C, 1, 1), dtype=jnp.float32) \
        + 0.1 * jax.random.normal(k6, (C, 1, 1), dtype=jnp.float32)

    params = (hori_low, hori_high, vert_low, vert_high, gamma, beta)

    out = jax.block_until_ready(frequency_strip_attention(x, params))
    ref = frequency_strip_attention_ref(x, params)
    assert out.shape == (N, C, H, W)
    assert jnp.allclose(out, ref, atol=1e-5, rtol=1e-5), "mismatch vs reference"

    print("KERNEL_OK")
</pallas_src>

<mosaic_0001>
module attributes {stable_mosaic.version = 11 : i64} {
  func.func @fsa_kernel(%arg0: i32, %arg1: i32, %arg2: memref<1x1x16x64xf32, #tpu.memory_space<vmem>>, %arg3: memref<1x5x64xf32, #tpu.memory_space<vmem>>, %arg4: memref<64x64xf32, #tpu.memory_space<vmem>>, %arg5: memref<16x16xf32, #tpu.memory_space<vmem>>, %arg6: memref<1x1x16x64xf32, #tpu.memory_space<vmem>>) attributes {dimension_semantics = [#tpu.dimension_semantics<parallel>, #tpu.dimension_semantics<parallel>], iteration_bounds = array<i64: 2, 1>, scalar_prefetch = 0 : i64, scratch_operands = 0 : i64, tpu.core_type = #tpu.core_type<tc>, window_params = [{transform_indices = @transform_0, window_bounds = array<i64: 1, 1, 16, 64>}, {transform_indices = @transform_1, window_bounds = array<i64: 1, 5, 64>}, {pipeline_mode = #tpu.pipeline_mode<synchronous>, transform_indices = @transform_2, window_bounds = array<i64: 64, 64>}, {pipeline_mode = #tpu.pipeline_mode<synchronous>, transform_indices = @transform_3, window_bounds = array<i64: 16, 16>}, {transform_indices = @transform_4, window_bounds = array<i64: 1, 1, 16, 64>}]} {
    %c0 = arith.constant 0 : index
    %c0_0 = arith.constant 0 : index
    %c0_1 = arith.constant 0 : index
    %c0_2 = arith.constant 0 : index
    %0 = vector.load %arg2[%c0, %c0_0, %c0_1, %c0_2] : memref<1x1x16x64xf32, #tpu.memory_space<vmem>>, vector<1x1x16x64xf32>
    %1 = vector.shape_cast %0 : vector<1x1x16x64xf32> to vector<1x16x64xf32>
    %2 = vector.shape_cast %1 : vector<1x16x64xf32> to vector<16x64xf32>
    %c0_3 = arith.constant 0 : index
    %c0_4 = arith.constant 0 : index
    %3 = vector.load %arg4[%c0_3, %c0_4] : memref<64x64xf32, #tpu.memory_space<vmem>>, vector<64x64xf32>
    %cst = arith.constant dense<0.000000e+00> : vector<16x64xf32>
    %4 = tpu.matmul %2, %3, %cst {dimension_numbers = #tpu.dot_dimension_numbers<[1], [0], [0], [1], [0, 0, 1, 1], [], []>, precision = #tpu.contract_precision<fp32>} : vector<16x64xf32>, vector<64x64xf32>, vector<16x64xf32> -> vector<16x64xf32>
    %5 = vector.shape_cast %4 : vector<16x64xf32> to vector<1x16x64xf32>
    %c0_5 = arith.constant 0 : index
    %c0_6 = arith.constant 0 : index
    %c0_7 = arith.constant 0 : index
    %6 = vector.load %arg3[%c0_5, %c0_6, %c0_7] : memref<1x5x64xf32, #tpu.memory_space<vmem>>, vector<1x5x64xf32>
    %c0_8 = arith.constant 0 : index
    %c0_9 = arith.constant 0 : index
    %7 = vector.load %arg5[%c0_8, %c0_9] : memref<16x16xf32, #tpu.memory_space<vmem>>, vector<16x16xf32>
    %8 = vector.extract_strided_slice %6 {offsets = [0, 0, 0], sizes = [1, 1, 64], strides = [1, 1, 1]} : vector<1x5x64xf32> to vector<1x1x64xf32>
    %9 = vector.shape_cast %8 : vector<1x1x64xf32> to vector<64xf32>
    %10 = vector.extract_strided_slice %6 {offsets = [0, 1, 0], sizes = [1, 1, 64], strides = [1, 1, 1]} : vector<1x5x64xf32> to vector<1x1x64xf32>
    %11 = vector.shape_cast %10 : vector<1x1x64xf32> to vector<64xf32>
    %12 = vector.extract_strided_slice %6 {offsets = [0, 2, 0], sizes = [1, 1, 64], strides = [1, 1, 1]} : vector<1x5x64xf32> to vector<1x1x64xf32>
    %13 = vector.shape_cast %12 : vector<1x1x64xf32> to vector<64xf32>
    %14 = vector.extract_strided_slice %6 {offsets = [0, 3, 0], sizes = [1, 1, 64], strides = [1, 1, 1]} : vector<1x5x64xf32> to vector<1x1x64xf32>
    %15 = vector.shape_cast %14 : vector<1x1x64xf32> to vector<64xf32>
    %16 = vector.extract_strided_slice %6 {offsets = [0, 4, 0], sizes = [1, 1, 64], strides = [1, 1, 1]} : vector<1x5x64xf32> to vector<1x1x64xf32>
    %17 = vector.shape_cast %16 : vector<1x1x64xf32> to vector<64xf32>
    %18 = vector.shape_cast %1 : vector<1x16x64xf32> to vector<16x64xf32>
    %19 = vector.shape_cast %9 : vector<64xf32> to vector<1x64xf32>
    %20 = vector.broadcast %19 : vector<1x64xf32> to vector<16x64xf32>
    %21 = arith.mulf %20, %18 : vector<16x64xf32>
    %22 = vector.shape_cast %5 : vector<1x16x64xf32> to vector<16x64xf32>
    %23 = vector.shape_cast %11 : vector<64xf32> to vector<1x64xf32>
    %24 = vector.broadcast %23 : vector<1x64xf32> to vector<16x64xf32>
    %25 = arith.mulf %24, %22 : vector<16x64xf32>
    %26 = arith.addf %21, %25 : vector<16x64xf32>
    %cst_10 = arith.constant dense<0.000000e+00> : vector<16x64xf32>
    %27 = tpu.matmul %7, %26, %cst_10 {dimension_numbers = #tpu.dot_dimension_numbers<[1], [0], [0], [1], [0, 0, 1, 1], [], []>, precision = #tpu.contract_precision<fp32>} : vector<16x16xf32>, vector<16x64xf32>, vector<16x64xf32> -> vector<16x64xf32>
    %28 = vector.shape_cast %17 : vector<64xf32> to vector<1x64xf32>
    %29 = vector.broadcast %28 : vector<1x64xf32> to vector<16x64xf32>
    %30 = arith.mulf %29, %18 : vector<16x64xf32>
    %31 = vector.shape_cast %13 : vector<64xf32> to vector<1x64xf32>
    %32 = vector.broadcast %31 : vector<1x64xf32> to vector<16x64xf32>
    %33 = arith.mulf %32, %26 : vector<16x64xf32>
    %34 = arith.addf %30, %33 : vector<16x64xf32>
    %35 = vector.shape_cast %15 : vector<64xf32> to vector<1x64xf32>
    %36 = vector.broadcast %35 : vector<1x64xf32> to vector<16x64xf32>
    %37 = arith.mulf %36, %27 : vector<16x64xf32>
    %38 = arith.addf %34, %37 : vector<16x64xf32>
    %c0_11 = arith.constant 0 : index
    %c0_12 = arith.constant 0 : index
    %c0_13 = arith.constant 0 : index
    %c0_14 = arith.constant 0 : index
    %39 = vector.load %arg6[%c0_11, %c0_12, %c0_13, %c0_14] : memref<1x1x16x64xf32, #tpu.memory_space<vmem>>, vector<1x1x16x64xf32>
    %40 = vector.shape_cast %39 : vector<1x1x16x64xf32> to vector<16x64xf32>
    %41 = vector.shape_cast %38 : vector<16x64xf32> to vector<1x1x16x64xf32>
    tpu.vector_store %arg6[%c0_11, %c0_12, %c0_13, %c0_14], %41 {strides = array<i32>} : memref<1x1x16x64xf32, #tpu.memory_space<vmem>>, vector<1x1x16x64xf32>,
    return
  }
  func.func @transform_0(%arg0: i32, %arg1: i32) -> (i32, i32, i32, i32) {
    %c0_i32 = arith.constant 0 : i32
    %c0_i32_0 = arith.constant 0 : i32
    %c0_i32_1 = arith.constant 0 : i32
    return %arg0, %arg1, %c0_i32, %c0_i32_0 : i32, i32, i32, i32
  }
  func.func @transform_1(%arg0: i32, %arg1: i32) -> (i32, i32, i32) {
    %c0_i32 = arith.constant 0 : i32
    %c0_i32_0 = arith.constant 0 : i32
    %c0_i32_1 = arith.constant 0 : i32
    return %arg1, %c0_i32, %c0_i32_0 : i32, i32, i32
  }
  func.func @transform_2(%arg0: i32, %arg1: i32) -> (i32, i32) {
    %c0_i32 = arith.constant 0 : i32
    %c0_i32_0 = arith.constant 0 : i32
    %c0_i32_1 = arith.constant 0 : i32
    return %c0_i32, %c0_i32_0 : i32, i32
  }
  func.func @transform_3(%arg0: i32, %arg1: i32) -> (i32, i32) {
    %c0_i32 = arith.constant 0 : i32
    %c0_i32_0 = arith.constant 0 : i32
    %c0_i32_1 = arith.constant 0 : i32
    return %c0_i32, %c0_i32_0 : i32, i32
  }
  func.func @transform_4(%arg0: i32, %arg1: i32) -> (i32, i32, i32, i32) {
    %c0_i32 = arith.constant 0 : i32
    %c0_i32_0 = arith.constant 0 : i32
    %c0_i32_1 = arith.constant 0 : i32
    return %arg0, %arg1, %c0_i32, %c0_i32_0 : i32, i32, i32, i32
  }
}

</mosaic_0001>

<bundles_post_ra>
// kernel: tpu_custom_call.1
= control target key start
LH: loop header
LB: loop body
LE: loop exit
PB: predicated region body
PF: predicated region fallthrough
CT: control target
= control target key end

     0   :  { %9 = vsyncpa [#allocation3], 0  ;;  %s2577_s0 = inlined_call_operand.hbm [shape: f32[2,1,16,64], index: 0, kind: input, shape index: {}]   ;;  %s2578_s1 = inlined_call_operand.vmem [shape: f32[1,5,64], index: 1, kind: input, shape index: {}]   ;;  %s2579_s2 = inlined_call_operand.hbm [shape: f32[64,64], index: 2, kind: input, shape index: {}]   ;;  %s2580_s3 = inlined_call_operand.vmem [shape: f32[16,16], index: 3, kind: input, shape index: {}]   ;;  %s2581_s4 = inlined_call_operand.hbm [shape: f32[2,1,16,64], index: 4, kind: output, shape index: {}]  }
   0x1   :  { %11 = vsyncpa [#allocation3 + $0x1], 0 }
   0x2   :  { %12 = vsyncpa [#allocation6], 0 }
   0x3   :  { %13 = vsyncpa [#allocation4], 0 }
   0x4   :  { %15 = vsyncpa [#allocation4 + $0x1], 0  ;;  %s2196_s15 = smov 0   ;;  %s2198_s16 = smov 0  }
   0x5   :  { %s2200_s17 = smov 0   ;;  %s2202_s18 = smov 0  }
   0x6   :  { %s2204_s19 = smov 0   ;;  %s2206_s20 = smov 0  }
   0x7 LB: > { %s1541_s21 = sadd.s32 4294967295, %s2162_s20   ;;  %s1542_s22 = sadd.s32 4294967294, %s2162_s20   ;;  %s2162_s20 = sphi %s2206_s20, %s21_s20   ;;  %s2158_s19 = sphi %s2204_s19, %s2605_s19   ;;  %s2154_s18 = sphi %s2202_s18, %s2604_s18   ;;  %s2150_s17 = sphi %s2200_s17, %s2603_s17   ;;  %s2146_s16 = sphi %s2198_s16, %s2602_s16   ;;  %s2142_s15 = sphi %s2196_s15, %s2601_s15  }
   0x8   : > { %p55_p0 = scmp.ne.s32.totalorder %s2146_s16, %s2142_s15  ;;  %p2230_p1 = scmp.eq.s32.totalorder %s1541_s21, 0 }
   0x9   : > { %p2234_p2 = scmp.eq.s32.totalorder %s1541_s21, 1  ;;  %p155_p3 = scmp.eq.s32.totalorder %s1542_s22, 1 }
   0xa   : > { %s2586_s23 = scalar_select %p2230_p1, 1, 0 }
   0xb   : > { %s2587_s24 = scalar_select %p2234_p2, 1, 0 }
   0xc   : > { %p2240_p4 = por %p2230_p1, %p55_p0  ;;  %p1543_p5 = scmp.ge.s32.totalorder %s2162_s20, 1 }
   0xd   : > { %p2245_p6 = por %p155_p3, %p55_p0  ;;  %p162_p7 = scmp.lt.s32.totalorder %s2162_s20, 3 }
   0xe   : > { %s2588_s25 = scalar_select %p2240_p4, 1, 0 }
   0xf   : > { %s2589_s26 = scalar_select %p2245_p6, 1, 0 }
  0x10   : > { %p2250_p8 = pnand %p1543_p5, %p162_p7  ;;  %s2164_s28 = smov [#allocation5]  }
  0x11   : > { %s181_s29 = sshll.u32 %s2164_s28, 4  ;;  %s33_s5 = sadd.s32 1, %s2158_s19  ;;  %s182_s29 = int_to_ptr.vmem [resolvable:$true] %s181_s29 }
  0x12   : > { %s2590_s27 = scalar_select %p2250_p8, 1, 0 }
  0x13   : > { %p1949_p9 = pneg %p2250_p8  ;;  %s2018_s8 = scalar_lea.hbm %s2579_s2, 1024 }
  0x14   : > { %p2019_p12 = scmp.ne.s32.totalorder %s2579_s2, %s2018_s8  ;;  %p2025_p5 = scmp.lt.u32.totalorder %s2018_s8, %s2579_s2 }
  0x15   : > { %p2259_p11 = pnand %p1949_p9, %p2230_p1 }
  0x17   : > { %p2020_p13 = pneg %p2259_p11 }
  0x19   : > { %p2021_p0 = pnand %p2020_p13, %p2019_p12 }
  0x1b   : > { %p2022_p3 = pneg %p2021_p0 }
  0x1d   : > { %p2027_p7 = pnand %p2025_p5, %p2022_p3 }
  0x1f   : > { %2030 = shalt.err (!%p2027_p7)
}
  0x20   : > { %s2031_s13 = scalar_lea.vmem %s182_s29, 1024  ;;  %p2039_p1 = scmp.lt.s32.totalorder %s182_s29, %s182_s29 }
  0x21   : > { %p2032_p9 = scmp.ne.s32.totalorder %s182_s29, %s2031_s13  ;;  %p2040_p4 = scmp.lt.s32.totalorder %s2031_s13, %s2031_s13 }
  0x23   : > { %p2034_p10 = pnand %p2032_p9, %p2020_p13  ;;  %p2041_p8 = por %p2040_p4, %p2039_p1 }
  0x25   : > { %p2035_p6 = pneg %p2034_p10 }
  0x27   : > { %p2042_p2 = pnand %p2041_p8, %p2035_p6 }
  0x29   : > { %2045 = shalt.err (!%p2042_p2)
}
  0x2a   : > { %s2165_s14 = smov 128   ;;  %s2166_s21 = smov 8  }
  0x2b   : > { %1952 = dma.hbm_to_vmem [thread:$0]  (!%p2259_p11), %s2579_s2, 1024, %s182_s29, [#allocation6], %s2165_s14, %s2165_s14, %s2166_s21  }
  0x2c   : > { %p35_p1 = scmp.ge.s32.totalorder %s33_s5, 2  ;;  %s42_s6 = sadd.s32 1, %s2150_s17 }
  0x2d   : > { %p49_p2 = scmp.ne.s32.totalorder %s2150_s17, %s2146_s16  ;;  %p50_p4 = scmp.eq.s32.totalorder %s2162_s20, 0 }
  0x2e   : > { %s2607_s5 = smov (%p35_p1, %s33_s5), 0  ;;  %p2593_p8 = scmp.ne.s32.totalorder %s2587_s24, 0 }
  0x2f   : > { %p2289_p6 = por %p50_p4, %p49_p2  ;;  %s37_s8 = ssub.s32 %s2158_s19, %s2607_s5 }
  0x30   : > { %p2295_p10 = por %p2593_p8, %p49_p2  ;;  %p1962_p12 = scmp.lt.s32.totalorder %s2162_s20, 2 }
  0x31   : > { %p40_p11 = scmp.eq.s32.totalorder %s37_s8, 0  ;;  %s198_s29 = sand.u32 1, %s2150_s17  }
  0x32   : > { %s1547_s9 = sshll.u32 %s198_s29, 4  ;;  %s1559_s11 = sshll.u32 %s2158_s19, 8 }
  0x33   : > { %s2304_s10 = scalar_select %p40_p11, %s2150_s17, %s42_s6  }
  0x34   : > { %s2310_s22 = scalar_lea.hbm %s2577_s0, %s1559_s11  ;;  %s202_s24 = scalar_lea.vmem [#allocation2], %s1547_s9 }
  0x35   : > { %s211_s28 = sshll.u32 %s202_s24, 4  ;;  %p2316_p13 = pnand %p1962_p12, %p2289_p6  ;;  %s2312_s28 = int_to_ptr.vmem [resolvable:$true] %s211_s28 }
  0x36   : > { %s2320_s6 = scalar_lea.sflag [#allocation3], %s198_s29  ;;  %s2046_s12 = scalar_lea.hbm %s2310_s22, 256 }
  0x37   : > { %p2047_p0 = scmp.ne.s32.totalorder %s2310_s22, %s2046_s12  ;;  %p2048_p3 = pneg %p2316_p13 }
  0x38   : > { %s2051_s7 = scalar_lea.hbm %s2577_s0, 512  ;;  %p2052_p9 = scmp.lt.u32.totalorder %s2310_s22, %s2577_s0 }
  0x39   : > { %p2049_p5 = pnand %p2048_p3, %p2047_p0  ;;  %p2053_p1 = scmp.lt.u32.totalorder %s2051_s7, %s2046_s12 }
  0x3a   : > { %p2055_p4 = scmp.lt.u32.totalorder %s2046_s12, %s2310_s22 }
  0x3b   : > { %p2050_p7 = pneg %p2049_p5  ;;  %p2054_p2 = por %p2053_p1, %p2052_p9 }
  0x3d   : > { %p2056_p6 = por %p2055_p4, %p2054_p2 }
  0x3f   : > { %p2057_p8 = pnand %p2056_p6, %p2050_p7 }
  0x41   : > { %2060 = shalt.err (!%p2057_p8)
}
  0x42   : > { %s2061_s29 = scalar_lea.vmem %s2312_s28, 256  ;;  %s2167_s9 = smov [#allocation2]  }
  0x43   : > { %p2062_p12 = scmp.ne.s32.totalorder %s2312_s28, %s2061_s29  ;;  %s2066_s11 = sshll.u32 %s2167_s9, 4  ;;  %s2067_s11 = int_to_ptr.vmem [resolvable:$false] %s2066_s11 }
  0x44   : > { %s2068_s13 = scalar_lea.vmem %s2067_s11, 512  ;;  %p2069_p5 = scmp.lt.s32.totalorder %s2312_s28, %s2067_s11 }
  0x45   : > { %p2064_p11 = pnand %p2062_p12, %p2048_p3  ;;  %p2070_p9 = scmp.lt.s32.totalorder %s2068_s13, %s2061_s29 }
  0x47   : > { %p2065_p0 = pneg %p2064_p11  ;;  %p2071_p1 = por %p2070_p9, %p2069_p5 }
  0x49   : > { %p2072_p2 = pnand %p2071_p1, %p2065_p0 }
  0x4b   : > { %2075 = shalt.err (!%p2072_p2)
}
  0x4c   : > { %1956 = dma.hbm_to_vmem [thread:$0]  (!%p2316_p13), %s2310_s22, 256, %s2312_s28, %s2320_s6, %s2165_s14, %s2165_s14, %s2166_s21  }
  0x4d   : > { %p2596_p3 = scmp.ne.s32.totalorder %s2590_s27, 0 }
  0x4e   : > { %s2354_s12 = sand.u32 (!%p2596_p3), 1, %s2146_s16   ;;  %p2597_p7 = scmp.ne.s32.totalorder (!%p2596_p3), %s2588_s25, 0 }
  0x4f   : > { %223 = sbr.rel (%p2596_p3) target bundleno = 660 (0x294), region = 36  ;;  %s1551_s7 = sshll.u32 (!%p2596_p3), %s2354_s12, 4 }
  0x50   : > { %s226_s24 = scalar_lea.sflag (!%p2596_p3), [#allocation3], %s2354_s12  ;;  %s229_s8 = scalar_lea.vmem (!%p2596_p3), [#allocation2], %s1551_s7 }
  0x56   : > { %2129 = dma.done.wait (%p2597_p7), %s226_s24, 256  }
  0x57   : > { %2131 = vsyncadd (%p2597_p7), %s226_s24, 4294967040  ;;  %p2598_p13 = scmp.ne.s32.totalorder %s2586_s23, 0 }
  0x59   : > { %2133 = dma.done.wait (%p2598_p13), [#allocation6], 1024  }
  0x5a   : > { %2135 = vsyncadd (%p2598_p13), [#allocation6], 4294966272  ;;  %v268_v0 = vld [vmem:[#allocation5] sm:$0xff]  ;;  %v269_v1 = vld [vmem:[#allocation5 + $0x8] sm:$0xff]  ;;  %vm276_vm0 = vcmask 523264   ;;  %vm880_vm1 = vcmask 130048  }
  0x5b   : > { %v270_v2 = vld [vmem:[#allocation5 + $0x10] sm:$0xff]  ;;  %v284_v3 = vand.u32 4294901760, %v268_v0  ;;  %v287_v4 = vand.u32 4294901760, %v269_v1  ;;  %v271_v5 = vld [vmem:[#allocation5 + $0x18] sm:$0xff]  ;;  %v272_v7 = vld [vmem:[#allocation5 + $0x20] sm:$0xff]  ;;  %s1560_s28 = sshll.u32 %s2154_s18, 8 }
  0x5c   : > { %v290_v6 = vand.u32 4294901760, %v270_v2  ;;  %v273_v8 = vld [vmem:[#allocation5 + $0x28] sm:$0xff]  ;;  %v293_v9 = vand.u32 4294901760, %v271_v5  ;;  %v296_v10 = vand.u32 4294901760, %v272_v7  ;;  %v274_v12 = vld [vmem:[#allocation5 + $0x30] sm:$0xff]  ;;  %v275_v13 = vld [vmem:[#allocation5 + $0x38] sm:$0xff]  ;;  %s2524_s13 = scalar_lea.hbm %s2581_s4, %s1560_s28 }
  0x5d   : > { %v299_v11 = vand.u32 4294901760, %v273_v8  ;;  %v2368_v14 = vpack.c.bf16 %v287_v4, %v284_v3  ;;  %v2370_v15 = vsub.f32 %v268_v0, %v284_v3  ;;  %v2372_v16 = vsub.f32 %v269_v1, %v287_v4  ;;  %v2376_v18 = vld [vmem:[%s229_s8] sm:$0xff]  ;;  %v2378_v19 = vld [vmem:[%s229_s8 + $0x8] sm:$0xff]  ;;  %s261_s6 = scalar_lea.vmem [#allocation7], %s1551_s7  ;;  %s1414_s18 = scalar_lea.sflag [#allocation4], %s2354_s12 }
  0x5e   : > { %v2374_v17 = vsub.f32 %v270_v2, %v290_v6  ;;  %v2380_v20 = vpack.c.bf16 %v293_v9, %v290_v6  ;;  %v2382_v21 = vsub.f32 %v271_v5, %v293_v9  ;;  %v2384_v22 = vsub.f32 %v272_v7, %v296_v10  ;;  %s1429_s29 = sshll.u32 %s261_s6, 4  ;;  %s2168_s24 = smov [#allocation7]   ;;  %s2526_s29 = int_to_ptr.vmem [resolvable:$true] %s1429_s29 }
  0x5f   : > { %v1833_v23 = vpack.c.bf16 %v2372_v16, %v2370_v15  ;;  %v2388_v24 = vsub.f32 %v273_v8, %v299_v11  ;;  %v302_v25 = vand.u32 4294901760, %v274_v12  ;;  %v305_v26 = vand.u32 4294901760, %v275_v13  ;;  %1802 = vmatprep.subr.bf16.mxu1 %v2368_v14  ;;  %s2076_s7 = scalar_lea.vmem %s2526_s29, 256  ;;  %s2080_s8 = sshll.u32 %s2168_s24, 4  ;;  %s2081_s8 = int_to_ptr.vmem [resolvable:$false] %s2080_s8 }
  0x60   : > { %v1837_v27 = vpack.c.bf16 %v2382_v21, %v2374_v17  ;;  %v278_v28 = vsel %vm276_vm0, %v2376_v18, 0  ;;  %1804 = vmatpush3.bf16.msra.mxu1 %v2368_v14  ;;  %v281_v29 = vsel %vm276_vm0, %v2378_v19, 0  ;;  %v379_v30 = vand.u32 4294901760, %v2370_v15  ;;  %p2077_p4 = scmp.ne.s32.totalorder %s2526_s29, %s2076_s7  ;;  %s2082_s23 = scalar_lea.vmem %s2081_s8, 512 }
  0x61   : > { %1834 = vmatprep.subr.bf16.mxu0 %v1833_v23  ;;  %v2399_v31 = vpack.c.bf16 %v299_v11, %v296_v10  ;;  %v1841_v32 = vpack.c.bf16 %v2388_v24, %v2384_v22  ;;  %v2403_v33 = vand.u32 4294901760, %v278_v28  ;;  %v2405_v34 = vand.u32 4294901760, %v281_v29  ;;  %1806 = vmatprep.subr.bf16.mxu1 %v2380_v20  ;;  %p2083_p12 = scmp.lt.s32.totalorder %s2526_s29, %s2081_s8  ;;  %p2084_p11 = scmp.lt.s32.totalorder %s2082_s23, %s2076_s7 }
  0x62   : > { %1836 = vmatpush3.bf16.msra.mxu0 %v1833_v23  ;;  %v380_v35 = vsub.f32 %v2370_v15, %v379_v30  ;;  %v386_v36 = vand.u32 4294901760, %v2372_v16  ;;  %v2412_v37 = vsub.f32 %v274_v12, %v302_v25  ;;  %v2414_v38 = vsub.f32 %v275_v13, %v305_v26  ;;  %p2078_p6 = pnand %p2077_p4, %p2295_p10 }
  0x63   : > { %1838 = vmatprep.subr.bf16.mxu0 %v1837_v27  ;;  %v393_v39 = vand.u32 4294901760, %v2374_v17  ;;  %v400_v40 = vand.u32 4294901760, %v2382_v21  ;;  %v357_v41 = vsub.f32 %v278_v28, %v2403_v33  ;;  %v2420_v42 = vsub.f32 %v281_v29, %v2405_v34  ;;  %p2085_p0 = por %p2084_p11, %p2083_p12 }
  0x64   : > { %1808 = vmatpush3.bf16.msra.mxu1 %v2380_v20  ;;  %v387_v43 = vsub.f32 %v2372_v16, %v386_v36  ;;  %v407_v44 = vand.u32 4294901760, %v2384_v22  ;;  %v2427_v45 = vpack.c.bf16 %v305_v26, %v302_v25  ;;  %v381_v46 = vand.u32 4294901760, %v380_v35  ;;  %p2079_p8 = pneg %p2078_p6 }
  0x65   : > { %1810 = vmatprep.subr.bf16.mxu1 %v2399_v31  ;;  %v394_v47 = vsub.f32 %v2374_v17, %v393_v39  ;;  %v401_v48 = vsub.f32 %v2382_v21, %v400_v40  ;;  %1699 = vmatprep.mubr.f32.mxu0 %v357_v41  ;;  %v358_v49 = vand.u32 4294901760, %v357_v41  ;;  %v368_v51 = vand.u32 4294901760, %v2420_v42 }
  0x66   : > { %1840 = vmatpush3.bf16.msra.mxu0 %v1837_v27  ;;  %v388_v50 = vand.u32 4294901760, %v387_v43  ;;  %v1845_v52 = vpack.c.bf16 %v2414_v38, %v2412_v37  ;;  %v414_v53 = vand.u32 4294901760, %v2388_v24  ;;  %v408_v57 = vsub.f32 %v2384_v22, %v407_v44  ;;  %v865_v27 = vld [vmem:[%s2580_s3 + $0x8] sm:$0xff]  ;;  %p2086_p5 = pnand %p2085_p0, %p2079_p8 }
  0x67   : > { %1842 = vmatprep.subr.bf16.mxu0 %v1841_v32  ;;  %v359_v54 = vsub.f32 %v357_v41, %v358_v49  ;;  %v369_v55 = vsub.f32 %v2420_v42, %v368_v51  ;;  %v395_v56 = vand.u32 4294901760, %v394_v47  ;;  %v402_v59 = vand.u32 4294901760, %v401_v48 }
  0x68   : > { %1812 = vmatpush3.bf16.msra.mxu1 %v2399_v31  ;;  %v1817_v58 = vpack.c.bf16 %v388_v50, %v381_v46  ;;  %v415_v60 = vsub.f32 %v2388_v24, %v414_v53  ;;  %v421_v61 = vand.u32 4294901760, %v2412_v37  ;;  %v428_v63 = vand.u32 4294901760, %v2414_v38 }
  0x69   : > { %1814 = vmatprep.subr.bf16.mxu1 %v2427_v45  ;;  %v360_v62 = vand.u32 4294901760, %v359_v54  ;;  %v370_v0 = vand.u32 4294901760, %v369_v55  ;;  %v409_v1 = vand.u32 4294901760, %v408_v57  ;;  %v1821_v2 = vpack.c.bf16 %v402_v59, %v395_v56 }
  0x6a   : > { %1844 = vmatpush3.bf16.msra.mxu0 %v1841_v32  ;;  %v416_v3 = vand.u32 4294901760, %v415_v60  ;;  %v422_v4 = vsub.f32 %v2412_v37, %v421_v61  ;;  %v429_v5 = vsub.f32 %v2414_v38, %v428_v63  ;;  %v1865_v10 = vpack.c.bf16 %v386_v36, %v379_v30  ;;  %v2500_v30 = vld [vmem:[%s2578_s1] sm:$0x1f] }
  0x6b   : > { %1846 = vmatprep.subr.bf16.mxu0 %v1845_v52  ;;  %1661 = vmatprep.mubr.f32.mxu1 %v360_v62  ;;  %v1869_v11 = vpack.c.bf16 %v400_v40, %v393_v39  ;;  %v1873_v12 = vpack.c.bf16 %v414_v53, %v407_v44  ;;  %v1877_v13 = vpack.c.bf16 %v428_v63, %v421_v61  ;;  %v866_v25 = vlaneseq }
  0x6c   : > { %1816 = vmatpush3.bf16.msra.mxu1 %v2427_v45  ;;  %v1825_v6 = vpack.c.bf16 %v416_v3, %v409_v1  ;;  %v423_v7 = vand.u32 4294901760, %v422_v4  ;;  %v430_v8 = vand.u32 4294901760, %v429_v5  ;;  %v885_v29 = vsel %vm880_vm1, %v865_v27, 0 }
  0x6d   : > { %1818 = vmatprep.subr.bf16.mxu1 %v1817_v58  ;;  %v2491_v26 = vshrl.u32 %v866_v25, 7  ;;  %v964_v32 = vand.u32 4294901760, %v885_v29 }
  0x6e   : > { %1848 = vmatpush3.bf16.msra.mxu0 %v1845_v52  ;;  %v1829_v9 = vpack.c.bf16 %v430_v8, %v423_v7 }
  0x6f   : > { %1850 = vmatprep.subr.bf16.mxu0 %v2368_v14  ;;  %1662 = vmatmul.mubr.f32.vlgmr.msra.gmra.mrb[0].mxu1 %v370_v0  ;;  %v868_v28 = vsub.s32 0, %v2491_v26  ;;  %v965_v36 = vsub.f32 %v885_v29, %v964_v32  ;;  %v1391_v63 = vsub.s32 4, %v2491_v26  ;;  %v1397_v0 = vsub.s32 2, %v2491_v26 }
  0x70   : > { %1820 = vmatpush3.bf16.msra.mxu1 %v1817_v58  ;;  %1680 = vmatprep.mubr.f32.mxu1 %v2403_v33  ;;  %v1405_v3 = vsub.s32 3, %v2491_v26 }
  0x71   : > { %1700 = vmatmul.mubr.f32.vlgmr.msra.gmra.mrb[0].mxu0 %v2420_v42  ;;  %1822 = vmatprep.subr.bf16.mxu1 %v1821_v2  ;;  %v966_v44 = vand.u32 4294901760, %v965_v36  ;;  %v1392_v1 = vrot.slane %v2500_v30, %v1391_v63 }
  0x72   : > { %1852 = vmatpush3.bf16.msra.mxu0 %v2368_v14  ;;  %1718 = vmatprep.mubr.f32.mxu0 %v358_v49 }
  0x73   : > { %1854 = vmatprep.subr.bf16.mxu0 %v2380_v20  ;;  %v967_v49 = vsub.f32 %v965_v36, %v966_v44  ;;  %v1394_v4 = vmul.f32 %v1392_v1, %v2378_v19  ;;  %v1393_v7 = vmul.f32 %v1392_v1, %v2376_v18 }
  0x74   : > { %1824 = vmatpush3.bf16.msra.mxu1 %v1821_v2  ;;  %v1398_v2 = vrot.slane %v2500_v30, %v1397_v0 }
  0x75   : > { %1826 = vmatprep.subr.bf16.mxu1 %v1825_v6  ;;  %v968_v54 = vand.u32 4294901760, %v967_v49 }
  0x76   : > { %1856 = vmatpush3.bf16.msra.mxu0 %v2380_v20 }
  0x77   : > { %1858 = vmatprep.subr.bf16.mxu0 %v2399_v31 }
  0x78   : > { %1828 = vmatpush3.bf16.msra.mxu1 %v1825_v6  ;;  %v1406_v6 = vrot.slane %v2500_v30, %v1405_v3 }
  0x79   : > { %1830 = vmatprep.subr.bf16.mxu1 %v1829_v9 }
  0x7a   : > { %1860 = vmatpush3.bf16.msra.mxu0 %v2399_v31 }
  0x7b   : > { %1862 = vmatprep.subr.bf16.mxu0 %v2427_v45 }
  0x7c   : > { %1832 = vmatpush3.bf16.msra.mxu1 %v1829_v9 }
  0x7e   : > { %1864 = vmatpush3.bf16.msra.mxu0 %v2427_v45 }
  0x7f   : > { %1866 = vmatprep.subr.bf16.mxu0 %v1865_v10  ;;  %1681 = vmatmul.mubr.f32.vlgmr.msra.gmra.mrb[0].mxu1 %v2405_v34 }
  0x81   : > { %1719 = vmatmul.mubr.f32.vlgmr.msra.gmra.mrb[0].mxu0 %v368_v51 }
  0x82   : > { %1868 = vmatpush3.bf16.msra.mxu0 %v1865_v10  ;;  %1737 = vmatprep.mubr.f32.mxu0 %v2403_v33 }
  0x83   : > { %1870 = vmatprep.subr.bf16.mxu0 %v1869_v11 }
  0x86   : > { %1872 = vmatpush3.bf16.msra.mxu0 %v1869_v11 }
  0x87   : > { %1874 = vmatprep.subr.bf16.mxu0 %v1873_v12 }
  0x8a   : > { %1876 = vmatpush3.bf16.msra.mxu0 %v1873_v12 }
  0x8b   : > { %1878 = vmatprep.subr.bf16.mxu0 %v1877_v13 }
  0x8e   : > { %1880 = vmatpush3.bf16.msra.mxu0 %v1877_v13 }
  0x8f   : > { %1882 = vmatprep.subr.bf16.mxu0 %v2368_v14 }
  0x91   : > { %1738 = vmatmul.mubr.f32.vlgmr.msra.gmra.mrb[0].mxu0 %v2405_v34 }
  0x92   : > { %1884 = vmatpush3.bf16.msra.mxu0 %v2368_v14  ;;  %1756 = vmatprep.mubr.f32.mxu0 %v2403_v33  ;;  %v864_v14 = vld [vmem:[%s2580_s3] sm:$0xff]  ;;  %v869_v33 = vrot.slane %v2500_v30, %v868_v28 }
  0x93   : > { %1886 = vmatprep.subr.bf16.mxu0 %v2380_v20  ;;  %v882_v15 = vsel %vm880_vm1, %v864_v14, 0 }
  0x94   : > { %v2488_v16 = vand.u32 4294901760, %v882_v15  ;;  %v871_v38 = vmul.f32 %v869_v33, %v2378_v19  ;;  %v870_v41 = vmul.f32 %v869_v33, %v2376_v18 }
  0x96   : > { %1888 = vmatpush3.bf16.msra.mxu0 %v2380_v20  ;;  %v955_v17 = vsub.f32 %v882_v15, %v2488_v16 }
  0x97   : > { %1890 = vmatprep.subr.bf16.mxu0 %v2399_v31 }
  0x98   : > { %v956_v20 = vand.u32 4294901760, %v955_v17 }
  0x9a   : > { %1892 = vmatpush3.bf16.msra.mxu0 %v2399_v31  ;;  %v957_v21 = vsub.f32 %v955_v17, %v956_v20  ;;  %v874_v31 = vsub.s32 1, %v2491_v26 }
  0x9b   : > { %1894 = vmatprep.subr.bf16.mxu0 %v2427_v45 }
  0x9c   : > { %v958_v22 = vand.u32 4294901760, %v957_v21 }
  0x9e   : > { %1896 = vmatpush3.bf16.msra.mxu0 %v2427_v45  ;;  %1763 = vmatprep.mubr.f32.mxu1 %v958_v22 }
  0xa1   : > { %1757 = vmatmul.mubr.f32.vlgmr.msra.gmra.mrb[0].mxu0 %v2405_v34  ;;  %v875_v34 = vrot.slane %v2500_v30, %v874_v31 }
 0x152   : > { %v1682_v23 = vpop.f32.mrb[0].mxu1 }
 0x153   : > { %v483_v24 = vpop.f32.mrb[1].mxu1 }
 0x174   : > { %v1758_v35 = vpop.f32.mrb[0].mxu0 }
 0x175   : > { %v1921_v37 = vadd.f32 %v1758_v35, %v1682_v23  ;;  %v853_v39 = vpop.f32.mrb[1].mxu0 }
 0x176   : > { %v1922_v40 = vadd.f32 %v853_v39, %v483_v24 }
 0x177   : > { %v877_v42 = vmul.f32 %v1921_v37, %v875_v34 }
 0x178   : > { %v876_v43 = vmul.f32 %v1922_v40, %v875_v34 }
 0x179   : > { %v879_v45 = vadd.f32 %v877_v42, %v871_v38 }
 0x17a   : > { %v878_v46 = vadd.f32 %v876_v43, %v870_v41 }
 0x17b   : > { %v891_v47 = vand.u32 4294901760, %v879_v45  ;;  %v1400_v5 = vmul.f32 %v1398_v2, %v879_v45 }
 0x17c   : > { %v888_v48 = vand.u32 4294901760, %v878_v46  ;;  %v1399_v8 = vmul.f32 %v1398_v2, %v878_v46 }
 0x17d   : > { %v983_v50 = vsub.f32 %v879_v45, %v891_v47  ;;  %v1402_v10 = vadd.f32 %v1400_v5, %v1394_v4 }
 0x17e   : > { %v1897_v51 = vpack.c.bf16 %v891_v47, %v888_v48  ;;  %v976_v52 = vsub.f32 %v878_v46, %v888_v48  ;;  %v1401_v13 = vadd.f32 %v1399_v8, %v1393_v7 }
 0x17f   : > { %v984_v53 = vand.u32 4294901760, %v983_v50 }
 0x180   : > { %1898 = vmatprep.subr.bf16.mxu1 %v1897_v51  ;;  %v977_v55 = vand.u32 4294901760, %v976_v52  ;;  %v1905_v56 = vpack.c.bf16 %v983_v50, %v976_v52 }
 0x181   : > { %1900 = vmatpush3.bf16.msra.mxu1 %v1897_v51  ;;  %v985_v57 = vsub.f32 %v983_v50, %v984_v53 }
 0x182   : > { %v978_v58 = vsub.f32 %v976_v52, %v977_v55  ;;  %v1913_v59 = vpack.c.bf16 %v984_v53, %v977_v55 }
 0x183   : > { %v986_v60 = vand.u32 4294901760, %v985_v57 }
 0x184   : > { %1764 = vmatmul.mubr.f32.vlgmr.msra.gmra.mrb[2].mxu1 %v968_v54  ;;  %v979_v61 = vand.u32 4294901760, %v978_v58 }
 0x185   : > { %1770 = vmatprep.mubr.f32.mxu1 %v2488_v16 }
 0x186   : > { %v1901_v62 = vpack.c.bf16 %v986_v60, %v979_v61 }
 0x188   : > { %1902 = vmatprep.subr.bf16.mxu1 %v1901_v62 }
 0x189   : > { %1904 = vmatpush3.bf16.msra.mxu1 %v1901_v62 }
 0x18a   : > { %1906 = vmatprep.subr.bf16.mxu1 %v1905_v56 }
 0x18c   : > { %1771 = vmatmul.mubr.f32.vlgmr.msra.gmra.mrb[2].mxu1 %v964_v32 }
 0x18d   : > { %1908 = vmatpush3.bf16.msra.mxu1 %v1905_v56  ;;  %1777 = vmatprep.mubr.f32.mxu1 %v955_v17 }
 0x18e   : > { %1910 = vmatprep.subr.bf16.mxu1 %v1897_v51 }
 0x194   : > { %1778 = vmatmul.mubr.f32.vlgmr.msra.gmra.mrb[2].mxu1 %v965_v36 }
 0x195   : > { %1912 = vmatpush3.bf16.msra.mxu1 %v1897_v51  ;;  %1784 = vmatprep.mubr.f32.mxu1 %v956_v20 }
 0x196   : > { %1914 = vmatprep.subr.bf16.mxu1 %v1913_v59 }
 0x19c   : > { %1785 = vmatmul.mubr.f32.vlgmr.msra.gmra.mrb[2].mxu1 %v966_v44 }
 0x19d   : > { %1916 = vmatpush3.bf16.msra.mxu1 %v1913_v59  ;;  %1791 = vmatprep.mubr.f32.mxu1 %v2488_v16 }
 0x19e   : > { %1918 = vmatprep.subr.bf16.mxu1 %v1897_v51 }
 0x1a4   : > { %1792 = vmatmul.mubr.f32.vlgmr.msra.gmra.mrb[2].mxu1 %v964_v32 }
 0x1a5   : > { %1920 = vmatpush3.bf16.msra.mxu1 %v1897_v51  ;;  %1798 = vmatprep.mubr.f32.mxu1 %v2488_v16 }
 0x1ac   : > { %1799 = vmatmul.mubr.f32.vlgmr.msra.gmra.mrb[2].mxu1 %v964_v32 }
 0x27f   : > { %v1800_v9 = vpop.f32.mrb[2].mxu1 }
 0x280   : > { %v1408_v11 = vmul.f32 %v1800_v9, %v1406_v6  ;;  %v1379_v12 = vpop.f32.mrb[3].mxu1 }
 0x281   : > { %v1407_v14 = vmul.f32 %v1406_v6, %v1379_v12 }
 0x282   : > { %v1410_v15 = vadd.f32 %v1408_v11, %v1402_v10 }
 0x283   : > { %v1409_v18 = vadd.f32 %v1407_v14, %v1401_v13 }
 0x284   : > { %1412 = vst.msk [vmem:[%s261_s6 + $0x8] sm:$0xff] %vm276_vm0, %v1410_v15 }
 0x285   : > { %1411 = vst.msk [vmem:[%s261_s6] sm:$0xff] %vm276_vm0, %v1409_v18 }
 0x286   : > { %2089 = shalt.err (!%p2086_p5)
}
 0x287   : > { %s2090_s25 = scalar_lea.hbm %s2524_s13, 256  ;;  %s2094_s21 = scalar_lea.hbm %s2581_s4, 512 }
 0x288   : > { %p2091_p9 = scmp.ne.s32.totalorder %s2524_s13, %s2090_s25  ;;  %p2095_p3 = scmp.lt.u32.totalorder %s2524_s13, %s2581_s4 }
 0x289   : > { %p2096_p7 = scmp.lt.u32.totalorder %s2094_s21, %s2090_s25  ;;  %p2098_p4 = scmp.lt.u32.totalorder %s2090_s25, %s2524_s13 }
 0x28a   : > { %p2092_p1 = pnand %p2091_p9, %p2295_p10 }
 0x28b   : > { %p2097_p13 = por %p2096_p7, %p2095_p3 }
 0x28c   : > { %p2093_p2 = pneg %p2092_p1 }
 0x28d   : > { %p2099_p6 = por %p2098_p4, %p2097_p13 }
 0x28f   : > { %p2100_p8 = pnand %p2099_p6, %p2093_p2 }
 0x291   : > { %2103 = shalt.err (!%p2100_p8)
}
 0x292   : > { %s2169_s6 = smov 128   ;;  %s2170_s9 = smov 8  }
 0x293   : > { %1947 = dma.vmem_to_hbm [thread:$0]  (%p2295_p10), %s2526_s29, 256, %s2524_s13, %s1414_s18, %s2169_s6, %s2169_s6, %s2170_s9  }
 0x294 PF: > { %s1444_s11 = sand.u32 1, %s2142_s15   ;;  %p2599_p12 = scmp.ne.s32.totalorder %s2589_s26, 0 }
 0x295   : > { %p2600_p11 = scmp.ge.s32.totalorder %s2162_s20, 2  ;;  %s1445_s7 = scalar_lea.sflag [#allocation4], %s1444_s11 }
 0x297   : > { %p1958_p0 = pnand %p2600_p11, %p2599_p12 }
 0x299   : > { %2137 = dma.done.wait (!%p1958_p0), %s1445_s7, 256  }
 0x29a   : > { %2139 = vsyncadd (!%p1958_p0), %s1445_s7, 4294967040  ;;  %s21_s20 = sadd.s32 1, %s2162_s20   ;;  %s2601_s15 = smov %s2146_s16 }
 0x29b   : > { %p18_p5 = scmp.ge.s32.totalorder %s21_s20, 4   ;;  %s2602_s16 = smov %s2150_s17 }
 0x29c   : > { %s2603_s17 = smov %s2304_s10  ;;  %s2604_s18 = smov %s2158_s19 }
 0x29d   : > { %s2605_s19 = smov %s2607_s5  ;;  %20 = sbr.rel (!%p18_p5) target bundleno = 7 (0x7), region = 88 }
 0x2a4   :  { %1450 = vsyncpa [#allocation3], 1 }
 0x2a5   :  { %1452 = vsyncpa [#allocation3 + $0x1], 1 }
 0x2a6   :  { %1453 = vsyncpa [#allocation6], 1 }
 0x2a7   :  { %1454 = vsyncpa [#allocation4], 1 }
 0x2a8   :  { %1456 = vsyncpa [#allocation4 + $0x1], 1 }

</bundles_post_ra>
